<compile_context>
chip_gen: v7x
topology: tpu7x:2x2x1
jax: 0.10.0
libtpu: 0.0.40
codegen_flags: <defaults>
</compile_context>

<pallas_src>
import functools

import jax
import jax.numpy as jnp
from jax.experimental import pallas as pl
from jax.experimental.pallas import tpu as pltpu


_MIB = 1024 * 1024
# One (T, TC) input block stays under this so double-buffered in+out blocks
# (plus pooling matrix / f32 accumulator) fit v7x's 64 MiB VMEM comfortably.
_PER_BUFFER_BUDGET = 4 * _MIB
# Largest banded pooling matrix we are willing to ship to the MXU path.
_POOL_MATRIX_BUDGET = 2 * _MIB


def _pool_matmul_kernel(p_ref, x_ref, o_ref, *, inv_k: float):
    """MXU path.  p_ref: (t_out, T) 0/1 band matrix, x_ref: (T, TC)."""
    acc = jnp.dot(p_ref[...], x_ref[...], preferred_element_type=jnp.float32)
    o_ref[...] = (acc * inv_k).astype(o_ref.dtype)


def _pool_slice_kernel(x_ref, o_ref, *, kernel_size: int, stride: int, t_out: int):
    """VPU fallback.  x_ref: (T_pad, TC) with T_pad % stride == 0 (wrapper pads)."""
    x = x_ref[...]                       # input dtype; no full-tile f32 copy
    t_pad, tc = x.shape
    n = t_pad // stride
    xr = x.reshape(n, stride, tc)        # x[i*stride + p] == xr[i, p]
    # One sublane de-interleave per phase, hoisted out of the k loop.
    phases = [xr[:, p, :] for p in range(min(stride, kernel_size))]
    # k = 0 initializes the accumulator (q = 0, p = 0); remaining taps add into
    # f32 (bf16 operands widen implicitly in the add).
    acc = phases[0][:t_out, :].astype(jnp.float32)
    for k in range(1, kernel_size):
        q, p = divmod(k, stride)
        acc = acc + phases[p][q:q + t_out, :]
    o_ref[...] = (acc * (1.0 / kernel_size)).astype(o_ref.dtype)


def _choose_channel_tile(c128: int, t_rows: int, itemsize: int) -> int:
    """Lane width (multiple of 128, <= 1024) for one channel tile.

    Prefers wide tiles (wide DMAs, fewer sequential grid steps) within the
    per-buffer VMEM budget, and does NOT require the tile to divide C — the
    wrapper pads C up to a multiple of the tile (waste capped at ~25%)."""
    budget_lanes = (_PER_BUFFER_BUDGET // max(1, t_rows * itemsize)) // 128 * 128
    max_lanes = max(128, min(1024, budget_lanes))
    if c128 <= max_lanes:
        return c128                      # single channel tile, zero padding waste
    for lanes in range(max_lanes, 127, -128):
        if ((-c128) % lanes) * 4 <= c128:
            return lanes
    return 128


def avg_pool(x: jax.Array, kernel_size: int, stride: int,
             force_path: str | None = None) -> jax.Array:
    """x: (B, T, C) -> (B, T_out, C), averaging over windows along the T axis."""
    assert x.ndim == 3
    B, T, C = x.shape
    assert kernel_size >= 1 and stride >= 1
    assert T >= kernel_size, "sequence too short for this kernel_size"
    t_out = (T - kernel_size) // stride + 1
    itemsize = jnp.dtype(x.dtype).itemsize

    if force_path is None:
        use_mxu = t_out * T * itemsize <= _POOL_MATRIX_BUDGET
    else:
        use_mxu = force_path == "mxu"

    # Pad T to a multiple of stride once, here (VPU fallback only).  The padded
    # rows are never read by any output window, so their values do not matter.
    t_rows = T
    if not use_mxu:
        t_rows = -(-T // stride) * stride
        if t_rows != T:
            x = jnp.pad(x, ((0, 0), (0, t_rows - T), (0, 0)))

    # Lane-dense channel tiling: pick tc, then pad C up to a multiple of it so
    # every output store is a full-width (unmasked) vst.
    c128 = -(-C // 128) * 128
    tc = _choose_channel_tile(c128, t_rows, itemsize)
    c_pad = -(-C // tc) * tc
    if c_pad != C:
        x = jnp.pad(x, ((0, 0), (0, 0), (0, c_pad - C)))
    grid = (B, c_pad // tc)

    # Explicit per-grid-step VMEM footprint (double-buffered in/out blocks plus
    # pooling matrix or phase/accumulator temporaries) -> derived vmem limit.
    in_block = t_rows * tc * itemsize
    out_block = t_out * tc * itemsize
    p_bytes = t_out * T * itemsize if use_mxu else 0
    scratch = t_out * tc * 4 + (0 if use_mxu else in_block)
    needed = 2 * (in_block + out_block + p_bytes) + scratch + 2 * _MIB
    if needed > 64 * _MIB:
        # TODO(synk): window-aligned T tiling (halo input blocks) to decouple the
        # per-block VMEM footprint from the sequence length for very long T.
        raise ValueError(
            f"avg_pool: per-step VMEM footprint ~{needed >> 20} MiB exceeds 64 MiB; "
            "sequence too long for whole-T blocking")
    vmem_limit = int(min(max(needed, 16 * _MIB), 64 * _MIB))

    cparams = pltpu.CompilerParams(
        dimension_semantics=("parallel", "parallel"),
        vmem_limit_bytes=vmem_limit,
    )
    out_shape = jax.ShapeDtypeStruct((B, t_out, c_pad), x.dtype)
    x_spec = pl.BlockSpec((None, t_rows, tc), lambda b, c: (b, 0, c))
    o_spec = pl.BlockSpec((None, t_out, tc), lambda b, c: (b, 0, c))

    if use_mxu:
        # Static banded pooling matrix with 0/1 entries (exact in any dtype); the
        # 1/kernel_size scale is applied in f32 inside the kernel, so non-power-of-2
        # kernel sizes incur no bias.
        rows = jnp.arange(t_out, dtype=jnp.int32)[:, None] * stride
        cols = jnp.arange(T, dtype=jnp.int32)[None, :]
        pool_mat = ((cols >= rows) & (cols < rows + kernel_size)).astype(x.dtype)
        kernel = functools.partial(_pool_matmul_kernel, inv_k=1.0 / kernel_size)
        out = pl.pallas_call(
            kernel,
            out_shape=out_shape,
            grid=grid,
            in_specs=[
                pl.BlockSpec((t_out, T), lambda b, c: (0, 0)),  # same block every step
                x_spec,
            ],
            out_specs=o_spec,
            compiler_params=cparams,
        )(pool_mat, x)
    else:
        kernel = functools.partial(
            _pool_slice_kernel, kernel_size=kernel_size, stride=stride, t_out=t_out)
        out = pl.pallas_call(
            kernel,
            out_shape=out_shape,
            grid=grid,
            in_specs=[x_spec],
            out_specs=o_spec,
            compiler_params=cparams,
        )(x)

    if c_pad != C:
        out = out[:, :, :C]
    return out


if __name__ == "__main__":
    key = jax.random.PRNGKey(0)
    B, T, C = 2, 16, 32
    kernel_size, stride = 4, 2

    x = jax.random.normal(key, (B, T, C), dtype=jnp.float32)

    # Default (MXU pooling-matrix) path and VPU fallback path.
    out = jax.block_until_ready(avg_pool(x, kernel_size, stride))
    out_vpu = jax.block_until_ready(avg_pool(x, kernel_size, stride, force_path="vpu"))

    # Pure-JAX reference of the same semantics (AvgPool1d over the T axis).
    t_out = (T - kernel_size) // stride + 1
    ref = jnp.stack(
        [x[:, t * stride: t * stride + kernel_size, :].mean(axis=1) for t in range(t_out)],
        axis=1,
    )
    assert out.shape == (B, t_out, C), out.shape
    assert out_vpu.shape == (B, t_out, C), out_vpu.shape
    assert jnp.allclose(out, ref, atol=1e-5, rtol=1e-5)
    assert jnp.allclose(out_vpu, ref, atol=1e-5, rtol=1e-5)

    print("KERNEL_OK")
</pallas_src>

<mosaic_0001>
module attributes {stable_mosaic.version = 11 : i64} {
  func.func @_pool_matmul_kernel(%arg0: i32, %arg1: i32, %arg2: memref<7x16xf32, #tpu.memory_space<vmem>>, %arg3: memref<1x16x128xf32, #tpu.memory_space<vmem>>, %arg4: memref<1x7x128xf32, #tpu.memory_space<vmem>>) attributes {dimension_semantics = [#tpu.dimension_semantics<parallel>, #tpu.dimension_semantics<parallel>], iteration_bounds = array<i64: 2, 1>, scalar_prefetch = 0 : i64, scratch_operands = 0 : i64, tpu.core_type = #tpu.core_type<tc>, window_params = [{pipeline_mode = #tpu.pipeline_mode<synchronous>, transform_indices = @transform_0, window_bounds = array<i64: 7, 16>}, {transform_indices = @transform_1, window_bounds = array<i64: 1, 16, 128>}, {transform_indices = @transform_2, window_bounds = array<i64: 1, 7, 128>}]} {
    %c0 = arith.constant 0 : index
    %c0_0 = arith.constant 0 : index
    %0 = vector.load %arg2[%c0, %c0_0] : memref<7x16xf32, #tpu.memory_space<vmem>>, vector<7x16xf32>
    %c0_1 = arith.constant 0 : index
    %c0_2 = arith.constant 0 : index
    %c0_3 = arith.constant 0 : index
    %1 = vector.load %arg3[%c0_1, %c0_2, %c0_3] : memref<1x16x128xf32, #tpu.memory_space<vmem>>, vector<1x16x128xf32>
    %2 = vector.shape_cast %1 : vector<1x16x128xf32> to vector<16x128xf32>
    %cst = arith.constant dense<0.000000e+00> : vector<7x128xf32>
    %3 = tpu.matmul %0, %2, %cst {dimension_numbers = #tpu.dot_dimension_numbers<[1], [0], [0], [1], [0, 0, 1, 1], [], []>} : vector<7x16xf32>, vector<16x128xf32>, vector<7x128xf32> -> vector<7x128xf32>
    %cst_4 = arith.constant 2.500000e-01 : f32
    %4 = vector.broadcast %cst_4 : f32 to vector<7x128xf32>
    %5 = arith.mulf %3, %4 : vector<7x128xf32>
    %c0_5 = arith.constant 0 : index
    %c0_6 = arith.constant 0 : index
    %c0_7 = arith.constant 0 : index
    %6 = vector.load %arg4[%c0_5, %c0_6, %c0_7] : memref<1x7x128xf32, #tpu.memory_space<vmem>>, vector<1x7x128xf32>
    %7 = vector.shape_cast %6 : vector<1x7x128xf32> to vector<7x128xf32>
    %8 = vector.shape_cast %5 : vector<7x128xf32> to vector<1x7x128xf32>
    tpu.vector_store %arg4[%c0_5, %c0_6, %c0_7], %8 {strides = array<i32>} : memref<1x7x128xf32, #tpu.memory_space<vmem>>, vector<1x7x128xf32>,
    return
  }
  func.func @transform_0(%arg0: i32, %arg1: i32) -> (i32, i32) {
    %c0_i32 = arith.constant 0 : i32
    %c0_i32_0 = arith.constant 0 : i32
    %c0_i32_1 = arith.constant 0 : i32
    return %c0_i32, %c0_i32_0 : i32, i32
  }
  func.func @transform_1(%arg0: i32, %arg1: i32) -> (i32, i32, i32) {
    %c0_i32 = arith.constant 0 : i32
    %c0_i32_0 = arith.constant 0 : i32
    return %arg0, %c0_i32, %arg1 : i32, i32, i32
  }
  func.func @transform_2(%arg0: i32, %arg1: i32) -> (i32, i32, i32) {
    %c0_i32 = arith.constant 0 : i32
    %c0_i32_0 = arith.constant 0 : i32
    return %arg0, %c0_i32, %arg1 : i32, i32, i32
  }
}

</mosaic_0001>

<bundles_post_ra>
// kernel: tpu_custom_call.1
= control target key start
LH: loop header
LB: loop body
LE: loop exit
PB: predicated region body
PF: predicated region fallthrough
CT: control target
= control target key end

     0   :  { %7 = vsyncpa [#allocation3], 0  ;;  %s780_s0 = inlined_call_operand.hbm [shape: f32[7,16], index: 0, kind: input, shape index: {}]   ;;  %s781_s1 = inlined_call_operand.hbm [shape: f32[2,16,128], index: 1, kind: input, shape index: {}]   ;;  %s782_s2 = inlined_call_operand.vmem [shape: f32[2,7,128], index: 2, kind: output, shape index: {}]  }
   0x1   :  { %8 = vsyncpa [#allocation5], 0 }
   0x2   :  { %10 = vsyncpa [#allocation5 + $0x1], 0  ;;  %s610_s9 = smov 0   ;;  %s612_s10 = smov 0  }
   0x3   :  { %s614_s11 = smov 0   ;;  %s616_s12 = smov 0  }
   0x4   :  { %s618_s13 = smov 0   ;;  %s620_s14 = smov 0  }
   0x5 LB: > { %s374_s15 = sadd.s32 4294967295, %s586_s14   ;;  %s58_s16 = sadd.s32 1, %s574_s11  ;;  %s586_s14 = sphi %s620_s14, %s16_s14   ;;  %s582_s13 = sphi %s618_s13, %s802_s13   ;;  %s578_s12 = sphi %s616_s12, %s801_s12   ;;  %s574_s11 = sphi %s614_s11, %s800_s11   ;;  %s570_s10 = sphi %s612_s10, %s799_s10   ;;  %s566_s9 = sphi %s610_s9, %s798_s9  }
   0x6   : > { %p65_p0 = scmp.ne.s32.totalorder %s574_s11, %s570_s10  ;;  %p66_p1 = scmp.eq.s32.totalorder %s586_s14, 0 }
   0x7   : > { %p71_p2 = scmp.ne.s32.totalorder %s570_s10, %s566_s9  ;;  %p644_p3 = scmp.eq.s32.totalorder %s374_s15, 0 }
   0x8   : > { %p67_p4 = por %p66_p1, %p65_p0  ;;  %p376_p5 = scmp.ge.s32.totalorder %s586_s14, 1 }
   0x9   : > { %s788_s17 = scalar_select %p644_p3, 1, 0 }
   0xa   : > { %p651_p6 = por %p644_p3, %p71_p2  ;;  %p110_p7 = scmp.lt.s32.totalorder %s586_s14, 3 }
   0xb   : > { %s588_s20 = smov [#allocation2]   ;;  %p418_p10 = scmp.lt.s32.totalorder %s586_s14, 2 }
   0xc   : > { %s789_s18 = scalar_select %p651_p6, 1, 0 }
   0xd   : > { %p656_p8 = pnand %p376_p5, %p110_p7  ;;  %s123_s21 = sshll.u32 %s588_s20, 4  ;;  %s124_s21 = int_to_ptr.vmem [resolvable:$true] %s123_s21 }
   0xe   : > { %s134_s22 = sand.u32 1, %s574_s11   ;;  %p670_p12 = pnand %p418_p10, %p67_p4 }
   0xf   : > { %s790_s19 = scalar_select %p656_p8, 1, 0 }
  0x10   : > { %p409_p9 = pneg %p656_p8  ;;  %s474_s27 = scalar_lea.hbm %s780_s0, 128 }
  0x11   : > { %s792_s24 = scalar_select %p670_p12, 1, 0 }
  0x12   : > { %p666_p11 = pnand %p409_p9, %p644_p3  ;;  %p475_p13 = scmp.ne.s32.totalorder %s780_s0, %s474_s27 }
  0x13   : > { %p481_p5 = scmp.lt.u32.totalorder %s474_s27, %s780_s0 }
  0x14   : > { %p476_p0 = pneg %p666_p11 }
  0x16   : > { %p477_p1 = pnand %p476_p0, %p475_p13 }
  0x18   : > { %p478_p2 = pneg %p477_p1 }
  0x1a   : > { %p483_p4 = pnand %p481_p5, %p478_p2 }
  0x1c   : > { %486 = shalt.err (!%p483_p4)
}
  0x1d   : > { %s487_s4 = scalar_lea.vmem %s124_s21, 128  ;;  %p495_p6 = scmp.lt.s32.totalorder %s124_s21, %s124_s21 }
  0x1e   : > { %p488_p7 = scmp.ne.s32.totalorder %s124_s21, %s487_s4  ;;  %p496_p3 = scmp.lt.s32.totalorder %s487_s4, %s487_s4 }
  0x20   : > { %p490_p9 = pnand %p488_p7, %p476_p0  ;;  %p497_p8 = por %p496_p3, %p495_p6 }
  0x22   : > { %p491_p10 = pneg %p490_p9 }
  0x24   : > { %p498_p12 = pnand %p497_p8, %p491_p10 }
  0x26   : > { %501 = shalt.err (!%p498_p12)
}
  0x27   : > { %412 = dma.hbm_to_vmem [thread:$0]  (!%p666_p11), %s780_s0, 128, %s124_s21, [#allocation3]  }
  0x28   : > { %s28_s7 = sadd.s32 1, %s582_s13  ;;  %s379_s8 = sshll.u32 %s134_s22, 4 }
  0x29   : > { %p30_p13 = scmp.ge.s32.totalorder %s28_s7, 2  ;;  %s389_s9 = sshll.u32 %s582_s13, 8 }
  0x2a   : > { %s138_s15 = scalar_lea.vmem [#allocation4], %s379_s8  ;;  %s699_s26 = scalar_lea.hbm %s781_s1, %s389_s9 }
  0x2b   : > { %s146_s20 = sshll.u32 %s138_s15, 4  ;;  %s804_s7 = smov (%p30_p13, %s28_s7), 0  ;;  %s701_s20 = int_to_ptr.vmem [resolvable:$true] %s146_s20 }
  0x2c   : > { %s53_s21 = ssub.s32 %s582_s13, %s804_s7  ;;  %s711_s28 = scalar_lea.sflag [#allocation5], %s134_s22 }
  0x2d   : > { %p705_p3 = scmp.eq.s32.totalorder %s53_s21, 0  ;;  %s502_s29 = scalar_lea.hbm %s699_s26, 256 }
  0x2e   : > { %p503_p6 = scmp.ne.s32.totalorder %s699_s26, %s502_s29  ;;  %p794_p8 = scmp.ne.s32.totalorder %s792_s24, 0 }
  0x2f   : > { %s507_s4 = scalar_lea.hbm %s781_s1, 512  ;;  %p508_p1 = scmp.lt.u32.totalorder %s699_s26, %s781_s1 }
  0x30   : > { %p504_p11 = pneg %p794_p8  ;;  %p509_p2 = scmp.lt.u32.totalorder %s507_s4, %s502_s29 }
  0x31   : > { %p511_p4 = scmp.lt.u32.totalorder %s502_s29, %s699_s26 }
  0x32   : > { %p505_p12 = pnand %p504_p11, %p503_p6  ;;  %p510_p5 = por %p509_p2, %p508_p1 }
  0x34   : > { %p506_p0 = pneg %p505_p12  ;;  %p512_p7 = por %p511_p4, %p510_p5 }
  0x36   : > { %p513_p9 = pnand %p512_p7, %p506_p0 }
  0x38   : > { %516 = shalt.err (!%p513_p9)
}
  0x39   : > { %s517_s22 = scalar_lea.vmem %s701_s20, 256  ;;  %s589_s8 = smov [#allocation4]  }
  0x3a   : > { %p518_p10 = scmp.ne.s32.totalorder %s701_s20, %s517_s22  ;;  %s522_s9 = sshll.u32 %s589_s8, 4  ;;  %s523_s9 = int_to_ptr.vmem [resolvable:$false] %s522_s9 }
  0x3b   : > { %s524_s15 = scalar_lea.vmem %s523_s9, 512  ;;  %p525_p12 = scmp.lt.s32.totalorder %s701_s20, %s523_s9 }
  0x3c   : > { %p520_p13 = pnand %p518_p10, %p504_p11  ;;  %p526_p1 = scmp.lt.s32.totalorder %s524_s15, %s517_s22 }
  0x3e   : > { %p521_p6 = pneg %p520_p13  ;;  %p527_p2 = por %p526_p1, %p525_p12 }
  0x40   : > { %p528_p5 = pnand %p527_p2, %p521_p6 }
  0x42   : > { %531 = shalt.err (!%p528_p5)
}
  0x43   : > { %s590_s23 = smov 128   ;;  %s591_s25 = smov 8  }
  0x44   : > { %416 = dma.hbm_to_vmem [thread:$0]  (!%p794_p8), %s699_s26, 256, %s701_s20, %s711_s28, %s590_s23, %s590_s23, %s591_s25  }
  0x45   : > { %s744_s21 = scalar_select %p705_p3, %s574_s11, %s58_s16  }
  0x46   : > { %p795_p11 = scmp.ne.s32.totalorder %s790_s19, 0 }
  0x47   : > { %p796_p0 = scmp.ne.s32.totalorder (!%p795_p11), %s788_s17, 0 }
  0x48   : > { %158 = sbr.rel (%p795_p11) target bundleno = 305 (0x131), region = 28 }
  0x4f   : > { %557 = dma.done.wait (%p796_p0), [#allocation3], 128  }
  0x50   : > { %559 = vsyncadd (%p796_p0), [#allocation3], 4294967168  ;;  %s164_s29 = sand.u32 1, %s570_s10   ;;  %p797_p8 = scmp.ne.s32.totalorder %s789_s18, 0 }
  0x51   : > { %s384_s30 = sshll.u32 %s164_s29, 4  ;;  %s165_s3 = scalar_lea.sflag [#allocation5], %s164_s29 }
  0x52   : > { %s168_s24 = scalar_lea.vmem [#allocation4], %s384_s30 }
  0x53   : > { %561 = dma.done.wait (%p797_p8), %s165_s3, 256  }
  0x54   : > { %563 = vsyncadd (%p797_p8), %s165_s3, 4294967040  ;;  %v592_v0 = vmov 0.0|0.0   ;;  %vm593_vm0 = vmmov 0   ;;  %v594_v1 = vmov 0.0   ;;  %v199_v2 = vld [vmem:[%s168_s24] sm:$0xff]  ;;  %v200_v3 = vld [vmem:[%s168_s24 + $0x8] sm:$0xff] }
  0x55   : > { %400 = vmatprep.subr.bf16.mxu0 %v592_v0  ;;  %397 = vmatprep.mubr.msk.f32.mxu0 %vm593_vm0, %v594_v1  ;;  %v401_v4 = vpack.c.bf16 %v200_v3, %v199_v2  ;;  %v198_v5 = vld [vmem:[#allocation2] sm:$0x7f]  ;;  %vm201_vm1 = vcmask 130048   ;;  %p191_p3 = scmp.lt.s32.totalorder %s578_s12, 1 }
  0x57   : > { %402 = vmatpush3.bf16.msra.mxu0 %v401_v4  ;;  %s806_s12 = smov (!%p191_p3, %s578_s12), 1 }
  0x58   : > { %s385_s16 = sshll.u32 %s806_s12, 3 }
  0x59   : > { %s197_s19 = scalar_lea.vmem %s782_s2, %s385_s16 }
  0x5a   : > { %398 = vmatmul.mubr.msk.f32.vlgmr.msra.gmra.mrb[0].mxu0 %vm201_vm1, %v198_v5 }
 0x12d   : > { %v271_v6 = vpop.f32.mrb[0].mxu0 }
 0x12e   : > { %v275_v7 = vmul.f32 0.25, %v271_v6  ;;  %v399_v8 = vpop.f32.mrb[1].mxu0 }
 0x130   : > { %276 = vst [vmem:[%s197_s19] sm:$0x7f] %v275_v7 }
 0x131 PF: > { %s16_s14 = sadd.s32 1, %s586_s14   ;;  %s798_s9 = smov %s570_s10 }
 0x132   : > { %p13_p4 = scmp.ge.s32.totalorder %s16_s14, 4   ;;  %s799_s10 = smov %s574_s11 }
 0x133   : > { %s800_s11 = smov %s744_s21  ;;  %s801_s12 = smov %s582_s13 }
 0x134   : > { %s802_s13 = smov %s804_s7  ;;  %15 = sbr.rel (!%p13_p4) target bundleno = 5 (0x5), region = 73 }
 0x13b   :  { %302 = vsyncpa [#allocation3], 1 }
 0x13c   :  { %304 = vsyncpa [#allocation3 + $0x1], 1 }
 0x13d   :  { %305 = vsyncpa [#allocation5], 1 }
 0x13e   :  { %307 = vsyncpa [#allocation5 + $0x1], 1 }

</bundles_post_ra>
